<compile_context>
chip_gen: v5e
topology: v5e:2x2
jax: 0.10.0
libtpu: 0.0.40
codegen_flags: <defaults>
</compile_context>

<pallas_src>
import functools

import jax
import jax.numpy as jnp
from jax.experimental import pallas as pl
from jax.experimental.pallas import tpu as pltpu

BN_EPS = 1e-5
LANE = 128


# ------------------------------ helpers ---------------------------------------
def _round_up(v, m):
    return (v + m - 1) // m * m


def _pad2(a, rows, cols):
    r, c = a.shape
    return jnp.pad(a, ((0, rows - r), (0, cols - c)))


def _vmem_limit_bytes():
    """Scoped VMEM limit derived from the chip (generous on 128-MiB parts,
    conservative on 64-MiB/TC parts); safe fallback if the query fails."""
    try:
        cap = int(pltpu.get_tpu_info().vmem_capacity_bytes)
    except Exception:
        cap = 64 * 1024 * 1024
    return max(32 * 1024 * 1024, min(cap * 3 // 4, 96 * 1024 * 1024))


def _choose_tiling(m, kp, cp, vmem_limit):
    """Largest M-tile whose double-buffered working set fits comfortably."""
    budget = max(int(vmem_limit * 0.6), 4 * 1024 * 1024)
    tm = 1024
    while tm > 16:
        need = 2 * tm * kp * 2 + 2 * kp * cp * 2 + 2 * tm * cp * 2 + 4 * 8 * cp * 4
        if need <= budget:
            break
        tm //= 2
    if m <= tm:
        tm = _round_up(m, 8)
    mp = _round_up(m, tm)
    return tm, mp


# ----------------------------- Pallas kernels ----------------------------------
def _matmul_stats_kernel(p_ref, w_ref, y_ref, sm_ref, sq_ref):
    """Pass 1: y = patches @ W (bf16 in, f32 acc, bf16 out) + per-tile stats.

    p_ref : (TM, Kp) bf16 im2col patch tile
    w_ref : (Kp, Cp) bf16 flattened conv weight (constant block index)
    y_ref : (TM, Cp) bf16 conv output tile
    sm_ref, sq_ref : (8, Cp) f32 per-tile partial sum / sumsq (broadcast rows)
    """
    y = jnp.dot(p_ref[...], w_ref[...], preferred_element_type=jnp.float32)
    y_ref[...] = y.astype(y_ref.dtype)
    s = jnp.sum(y, axis=0, keepdims=True)
    q = jnp.sum(y * y, axis=0, keepdims=True)
    sm_ref[...] = jnp.broadcast_to(s, sm_ref.shape)
    sq_ref[...] = jnp.broadcast_to(q, sq_ref.shape)


def _bn_epilogue_kernel(*refs, residual_mode, apply_relu):
    """Pass 2: y*scale + bias (+ residual / fused downsample BN) (+ ReLU).

    residual_mode:
      "none" : refs = (y, scale, bias, out)
      "raw"  : refs = (y, scale, bias, residual, out)
      "bn"   : refs = (y, scale, bias, ry, rscale, rbias, out)
    """
    if residual_mode == "none":
        y_ref, s_ref, b_ref, o_ref = refs
    elif residual_mode == "raw":
        y_ref, s_ref, b_ref, r_ref, o_ref = refs
    else:  # "bn"
        y_ref, s_ref, b_ref, ry_ref, rs_ref, rb_ref, o_ref = refs

    out = y_ref[...].astype(jnp.float32) * s_ref[...] + b_ref[...]
    if residual_mode == "raw":
        out = out + r_ref[...].astype(jnp.float32)
    elif residual_mode == "bn":
        out = out + (ry_ref[...].astype(jnp.float32) * rs_ref[...] + rb_ref[...])
    if apply_relu:
        out = jnp.maximum(out, 0.0)
    o_ref[...] = out.astype(o_ref.dtype)


# ----------------------------- kernel wrappers ----------------------------------
def matmul_stats(patches, w_flat, *, tm, vmem_limit):
    """patches (Mp, Kp) bf16, w_flat (Kp, Cp) bf16 ->
       y (Mp, Cp) bf16, partial sum/sumsq (num_tiles*8, Cp) f32."""
    Mp, Kp = patches.shape
    Cp = w_flat.shape[1]
    nt = Mp // tm
    return pl.pallas_call(
        _matmul_stats_kernel,
        out_shape=(jax.ShapeDtypeStruct((Mp, Cp), jnp.bfloat16),
                   jax.ShapeDtypeStruct((nt * 8, Cp), jnp.float32),
                   jax.ShapeDtypeStruct((nt * 8, Cp), jnp.float32)),
        grid_spec=pltpu.PrefetchScalarGridSpec(
            num_scalar_prefetch=0,
            grid=(nt,),
            in_specs=[pl.BlockSpec((tm, Kp), lambda i: (i, 0)),
                      pl.BlockSpec((Kp, Cp), lambda i: (0, 0))],
            out_specs=[pl.BlockSpec((tm, Cp), lambda i: (i, 0)),
                       pl.BlockSpec((8, Cp), lambda i: (i, 0)),
                       pl.BlockSpec((8, Cp), lambda i: (i, 0))]),
        compiler_params=pltpu.CompilerParams(
            dimension_semantics=("parallel",),   # per-tile stats -> no carry
            vmem_limit_bytes=vmem_limit),
        cost_estimate=pl.CostEstimate(
            flops=2 * Mp * Kp * Cp,
            transcendentals=0,
            bytes_accessed=int(Mp * Kp * 2 + Kp * Cp * 2 + Mp * Cp * 2
                               + 2 * nt * 8 * Cp * 4)),
    )(patches, w_flat)


def bn_epilogue(y, scale, bias, *, tm, apply_relu, out_dtype, vmem_limit,
                residual=None, residual_bn=None):
    Mp, Cp = y.shape
    tile = pl.BlockSpec((tm, Cp), lambda i: (i, 0))
    row = pl.BlockSpec((1, Cp), lambda i: (0, 0))

    inputs = [y, scale, bias]
    in_specs = [tile, row, row]
    bytes_big = Mp * Cp * (y.dtype.itemsize + jnp.dtype(out_dtype).itemsize)
    if residual is not None:
        mode = "raw"
        inputs.append(residual)
        in_specs.append(tile)
        bytes_big += residual.size * residual.dtype.itemsize
    elif residual_bn is not None:
        mode = "bn"
        ry, rs, rb = residual_bn
        inputs += [ry, rs, rb]
        in_specs += [tile, row, row]
        bytes_big += ry.size * ry.dtype.itemsize
    else:
        mode = "none"

    kernel = functools.partial(_bn_epilogue_kernel, residual_mode=mode,
                               apply_relu=apply_relu)
    return pl.pallas_call(
        kernel,
        out_shape=jax.ShapeDtypeStruct((Mp, Cp), out_dtype),
        grid_spec=pltpu.PrefetchScalarGridSpec(
            num_scalar_prefetch=0,
            grid=(Mp // tm,),
            in_specs=in_specs,
            out_specs=tile),
        compiler_params=pltpu.CompilerParams(
            dimension_semantics=("parallel",),
            vmem_limit_bytes=vmem_limit),
        cost_estimate=pl.CostEstimate(flops=4 * Mp * Cp, transcendentals=0,
                                      bytes_accessed=int(bytes_big)),
    )(*inputs)


# ------------------------------ JAX glue ---------------------------------------
def _im2col(x_nhwc, ksize, stride, dilation, padding):
    """(ksize x ksize) dilated/strided patches -> (M, k*k*Cin) in (kh,kw,cin) order."""
    N, H, W, C = x_nhwc.shape
    xp = jnp.pad(x_nhwc, ((0, 0), (padding, padding), (padding, padding), (0, 0)))
    Ho = (H + 2 * padding - dilation * (ksize - 1) - 1) // stride + 1
    Wo = (W + 2 * padding - dilation * (ksize - 1) - 1) // stride + 1
    cols = []
    for kh in range(ksize):
        for kw in range(ksize):
            sl = xp[
                :,
                kh * dilation: kh * dilation + stride * (Ho - 1) + 1: stride,
                kw * dilation: kw * dilation + stride * (Wo - 1) + 1: stride,
                :,
            ]
            cols.append(sl)
    patches = jnp.concatenate(cols, axis=-1)      # (N, Ho, Wo, k*k*C)
    return patches.reshape(N * Ho * Wo, ksize * ksize * C)


def _flatten_weight(w_oihw):
    """PyTorch (Cout, Cin, kh, kw) -> (kh*kw*Cin, Cout), matching _im2col order."""
    co, ci, kh, kw = w_oihw.shape
    return jnp.transpose(w_oihw, (2, 3, 1, 0)).reshape(kh * kw * ci, co)


def _prep_conv(x_nhwc_bf16, w_oihw, ksize, stride, dilation, padding, mp, cp):
    """im2col + pad to (Mp, Kp) bf16 patches and (Kp, Cp) bf16 weight."""
    cin_x = x_nhwc_bf16.shape[-1]
    ci = w_oihw.shape[1]
    if cin_x != ci:   # activation kept channel-padded -> zero-pad weight Cin dim
        w_oihw = jnp.pad(w_oihw, ((0, 0), (0, cin_x - ci), (0, 0), (0, 0)))
    p = _im2col(x_nhwc_bf16, ksize, stride, dilation, padding)
    kp = _round_up(p.shape[1], LANE)
    p = _pad2(p, mp, kp)
    w = _pad2(_flatten_weight(w_oihw).astype(jnp.bfloat16), kp, cp)
    return p, w


def _bn_scale_bias(sum_partial, sq_partial, gamma, beta, m_true, cp):
    """Reduce per-tile stats and fold BN into per-channel scale/bias rows."""
    ysum = jnp.sum(sum_partial, axis=0) / 8.0     # each tile's sum is broadcast x8
    ysq = jnp.sum(sq_partial, axis=0) / 8.0
    mean = ysum / float(m_true)
    var = jnp.maximum(ysq / float(m_true) - mean * mean, 0.0)
    inv = jax.lax.rsqrt(var + BN_EPS)
    g = jnp.pad(gamma.astype(jnp.float32), (0, cp - gamma.shape[0]))
    b = jnp.pad(beta.astype(jnp.float32), (0, cp - beta.shape[0]))
    scale = g * inv                               # zero in padded channels
    bias = b - mean * scale
    return scale.reshape(1, cp), bias.reshape(1, cp)


def basic_block_forward(x_nchw, params, *, stride=1, dilation=1):
    x = jnp.transpose(x_nchw, (0, 2, 3, 1))       # NHWC
    N, H, W, Cin = x.shape
    C = params["conv1_w"].shape[0]                # expansion == 1
    Cp = _round_up(C, LANE)

    Ho = (H - 1) // stride + 1                    # 3x3, padding == dilation
    Wo = (W - 1) // stride + 1
    M = N * Ho * Wo                               # same for conv1/conv2/downsample

    c_mid = Cp if Cp == C else C                  # channels fed to conv2
    kp_max = max(_round_up(9 * Cin, LANE), _round_up(9 * c_mid, LANE),
                 _round_up(Cin, LANE))
    vmem_limit = _vmem_limit_bytes()
    tm, Mp = _choose_tiling(M, kp_max, Cp, vmem_limit)

    x_bf16 = x.astype(jnp.bfloat16)

    # ---- conv1 + bn1 + relu -------------------------------------------------
    p1, w1 = _prep_conv(x_bf16, params["conv1_w"], 3, stride, dilation, dilation,
                        Mp, Cp)
    y1, s1, q1 = matmul_stats(p1, w1, tm=tm, vmem_limit=vmem_limit)
    sc1, bi1 = _bn_scale_bias(s1, q1, params["bn1_g"], params["bn1_b"], M, Cp)
    a1 = bn_epilogue(y1, sc1, bi1, tm=tm, apply_relu=True,
                     out_dtype=jnp.bfloat16, vmem_limit=vmem_limit)

    # ---- shortcut -----------------------------------------------------------
    residual = None
    residual_bn = None
    if stride != 1 or Cin != C:
        pd, wd = _prep_conv(x_bf16, params["down_w"], 1, stride, 1, 0, Mp, Cp)
        yd, sd, qd = matmul_stats(pd, wd, tm=tm, vmem_limit=vmem_limit)
        scd, bid = _bn_scale_bias(sd, qd, params["down_g"], params["down_b"], M, Cp)
        residual_bn = (yd, scd, bid)              # downsample BN fused into epilogue
    else:
        residual = _pad2(x_bf16.reshape(M, Cin), Mp, Cp)   # bf16 identity shortcut

    # ---- conv2 + bn2 + residual add + relu ----------------------------------
    if Mp == M and Cp == C:
        a1_nhwc = a1.reshape(N, Ho, Wo, Cp)       # keep lane-padded layout
    else:
        a1_nhwc = a1[:M, :C].reshape(N, Ho, Wo, C)
    p2, w2 = _prep_conv(a1_nhwc, params["conv2_w"], 3, 1, dilation, dilation,
                        Mp, Cp)
    y2, s2, q2 = matmul_stats(p2, w2, tm=tm, vmem_limit=vmem_limit)
    sc2, bi2 = _bn_scale_bias(s2, q2, params["bn2_g"], params["bn2_b"], M, Cp)
    out = bn_epilogue(y2, sc2, bi2, tm=tm, apply_relu=True,
                      out_dtype=jnp.float32, vmem_limit=vmem_limit,
                      residual=residual, residual_bn=residual_bn)
    out = out[:M, :C].reshape(N, Ho, Wo, C)
    return jnp.transpose(out, (0, 3, 1, 2))       # back to NCHW


# --------------------------- pure-JAX reference --------------------------------
def _conv_ref(x, w, stride, dilation, padding):
    return jax.lax.conv_general_dilated(
        x, w, (stride, stride), [(padding, padding)] * 2,
        rhs_dilation=(dilation, dilation),
        dimension_numbers=("NCHW", "OIHW", "NCHW"),
    )


def _bn_ref(y, gamma, beta):
    mean = y.mean(axis=(0, 2, 3), keepdims=True)
    var = jnp.square(y - mean).mean(axis=(0, 2, 3), keepdims=True)
    return ((y - mean) * jax.lax.rsqrt(var + BN_EPS) * gamma.reshape(1, -1, 1, 1)
            + beta.reshape(1, -1, 1, 1))


def basic_block_ref(x, params, *, stride=1, dilation=1):
    out = jax.nn.relu(_bn_ref(_conv_ref(x, params["conv1_w"], stride, dilation, dilation),
                              params["bn1_g"], params["bn1_b"]))
    out = _bn_ref(_conv_ref(out, params["conv2_w"], 1, dilation, dilation),
                  params["bn2_g"], params["bn2_b"])
    Cin = x.shape[1]
    C = params["conv1_w"].shape[0]
    if stride != 1 or Cin != C:
        sc = _bn_ref(_conv_ref(x, params["down_w"], stride, 1, 0),
                     params["down_g"], params["down_b"])
    else:
        sc = x
    return jax.nn.relu(out + sc)


# ----------------------------------- main --------------------------------------
def _make_params(key, cin, channels):
    ks = jax.random.split(key, 7)
    return {
        "conv1_w": 0.1 * jax.random.normal(ks[0], (channels, cin, 3, 3), jnp.float32),
        "bn1_g": 1.0 + 0.1 * jax.random.normal(ks[1], (channels,), jnp.float32),
        "bn1_b": 0.1 * jax.random.normal(ks[2], (channels,), jnp.float32),
        "conv2_w": 0.1 * jax.random.normal(ks[3], (channels, channels, 3, 3), jnp.float32),
        "bn2_g": 1.0 + 0.1 * jax.random.normal(ks[4], (channels,), jnp.float32),
        "bn2_b": 0.1 * jax.random.normal(ks[5], (channels,), jnp.float32),
        "down_w": 0.1 * jax.random.normal(ks[6], (channels, cin, 1, 1), jnp.float32),
        "down_g": jnp.ones((channels,), jnp.float32),
        "down_b": jnp.zeros((channels,), jnp.float32),
    }


if __name__ == "__main__":
    key = jax.random.PRNGKey(0)
    k_a, k_b, k_xa, k_xb = jax.random.split(key, 4)

    # Config A: stride 2, Cin != C  -> exercises fused downsample-BN residual path.
    N, Cin, H, W, C = 2, 4, 16, 16, 8
    params_a = _make_params(k_a, Cin, C)
    x_a = jax.random.normal(k_xa, (N, Cin, H, W), jnp.float32)
    fwd_a = jax.jit(functools.partial(basic_block_forward, stride=2, dilation=1))
    out_a = jax.block_until_ready(fwd_a(x_a, params_a))
    ref_a = basic_block_ref(x_a, params_a, stride=2, dilation=1)
    assert out_a.shape == ref_a.shape, (out_a.shape, ref_a.shape)
    err_a = float(jnp.max(jnp.abs(out_a - ref_a)))
    assert jnp.allclose(out_a, ref_a, rtol=2e-2, atol=2e-2), err_a

    # Config B: stride 1, Cin == C, dilation 2 -> exercises identity-shortcut path.
    params_b = _make_params(k_b, C, C)
    x_b = jax.random.normal(k_xb, (N, C, H, W), jnp.float32)
    fwd_b = jax.jit(functools.partial(basic_block_forward, stride=1, dilation=2))
    out_b = jax.block_until_ready(fwd_b(x_b, params_b))
    ref_b = basic_block_ref(x_b, params_b, stride=1, dilation=2)
    assert out_b.shape == ref_b.shape, (out_b.shape, ref_b.shape)
    err_b = float(jnp.max(jnp.abs(out_b - ref_b)))
    assert jnp.allclose(out_b, ref_b, rtol=2e-2, atol=2e-2), err_b

    print("KERNEL_OK")
</pallas_src>

<mosaic_0001>
module attributes {stable_mosaic.version = 11 : i64} {
  func.func @_matmul_stats_kernel(%arg0: i32, %arg1: memref<128x128xbf16, #tpu.memory_space<vmem>>, %arg2: memref<128x128xbf16, #tpu.memory_space<vmem>>, %arg3: memref<128x128xbf16, #tpu.memory_space<vmem>>, %arg4: memref<8x128xf32, #tpu.memory_space<vmem>>, %arg5: memref<8x128xf32, #tpu.memory_space<vmem>>) attributes {dimension_semantics = [#tpu.dimension_semantics<parallel>], iteration_bounds = array<i64: 1>, scalar_prefetch = 0 : i64, scratch_operands = 0 : i64, tpu.core_type = #tpu.core_type<tc>, window_params = [{transform_indices = @transform_0, window_bounds = array<i64: 128, 128>}, {pipeline_mode = #tpu.pipeline_mode<synchronous>, transform_indices = @transform_1, window_bounds = array<i64: 128, 128>}, {transform_indices = @transform_2, window_bounds = array<i64: 128, 128>}, {transform_indices = @transform_3, window_bounds = array<i64: 8, 128>}, {transform_indices = @transform_4, window_bounds = array<i64: 8, 128>}]} {
    %c0 = arith.constant 0 : index
    %c0_0 = arith.constant 0 : index
    %0 = vector.load %arg1[%c0, %c0_0] : memref<128x128xbf16, #tpu.memory_space<vmem>>, vector<128x128xbf16>
    %c0_1 = arith.constant 0 : index
    %c0_2 = arith.constant 0 : index
    %1 = vector.load %arg2[%c0_1, %c0_2] : memref<128x128xbf16, #tpu.memory_space<vmem>>, vector<128x128xbf16>
    %cst = arith.constant dense<0.000000e+00> : vector<128x128xf32>
    %2 = tpu.matmul %0, %1, %cst {dimension_numbers = #tpu.dot_dimension_numbers<[1], [0], [0], [1], [0, 0, 1, 1], [], []>} : vector<128x128xbf16>, vector<128x128xbf16>, vector<128x128xf32> -> vector<128x128xf32>
    %3 = arith.truncf %2 : vector<128x128xf32> to vector<128x128xbf16>
    %c0_3 = arith.constant 0 : index
    %c0_4 = arith.constant 0 : index
    %4 = vector.load %arg3[%c0_3, %c0_4] : memref<128x128xbf16, #tpu.memory_space<vmem>>, vector<128x128xbf16>
    tpu.vector_store %arg3[%c0_3, %c0_4], %3 {strides = array<i32>} : memref<128x128xbf16, #tpu.memory_space<vmem>>, vector<128x128xbf16>,
    %cst_5 = arith.constant dense<0.000000e+00> : vector<128xf32>
    %5 = vector.multi_reduction <add>, %2, %cst_5 [0] : vector<128x128xf32> to vector<128xf32>
    %6 = vector.shape_cast %5 : vector<128xf32> to vector<1x128xf32>
    %7 = arith.mulf %2, %2 : vector<128x128xf32>
    %cst_6 = arith.constant dense<0.000000e+00> : vector<128xf32>
    %8 = vector.multi_reduction <add>, %7, %cst_6 [0] : vector<128x128xf32> to vector<128xf32>
    %9 = vector.shape_cast %8 : vector<128xf32> to vector<1x128xf32>
    %10 = vector.shape_cast %6 : vector<1x128xf32> to vector<1x128xf32>
    %11 = vector.broadcast %10 : vector<1x128xf32> to vector<8x128xf32>
    %c0_7 = arith.constant 0 : index
    %c0_8 = arith.constant 0 : index
    %12 = vector.load %arg4[%c0_7, %c0_8] : memref<8x128xf32, #tpu.memory_space<vmem>>, vector<8x128xf32>
    tpu.vector_store %arg4[%c0_7, %c0_8], %11 {strides = array<i32>} : memref<8x128xf32, #tpu.memory_space<vmem>>, vector<8x128xf32>,
    %13 = vector.shape_cast %9 : vector<1x128xf32> to vector<1x128xf32>
    %14 = vector.broadcast %13 : vector<1x128xf32> to vector<8x128xf32>
    %c0_9 = arith.constant 0 : index
    %c0_10 = arith.constant 0 : index
    %15 = vector.load %arg5[%c0_9, %c0_10] : memref<8x128xf32, #tpu.memory_space<vmem>>, vector<8x128xf32>
    tpu.vector_store %arg5[%c0_9, %c0_10], %14 {strides = array<i32>} : memref<8x128xf32, #tpu.memory_space<vmem>>, vector<8x128xf32>,
    return
  }
  func.func @transform_0(%arg0: i32) -> (i32, i32) {
    %c0_i32 = arith.constant 0 : i32
    %c0_i32_0 = arith.constant 0 : i32
    return %arg0, %c0_i32 : i32, i32
  }
  func.func @transform_1(%arg0: i32) -> (i32, i32) {
    %c0_i32 = arith.constant 0 : i32
    %c0_i32_0 = arith.constant 0 : i32
    %c0_i32_1 = arith.constant 0 : i32
    return %c0_i32, %c0_i32_0 : i32, i32
  }
  func.func @transform_2(%arg0: i32) -> (i32, i32) {
    %c0_i32 = arith.constant 0 : i32
    %c0_i32_0 = arith.constant 0 : i32
    return %arg0, %c0_i32 : i32, i32
  }
  func.func @transform_3(%arg0: i32) -> (i32, i32) {
    %c0_i32 = arith.constant 0 : i32
    %c0_i32_0 = arith.constant 0 : i32
    return %arg0, %c0_i32 : i32, i32
  }
  func.func @transform_4(%arg0: i32) -> (i32, i32) {
    %c0_i32 = arith.constant 0 : i32
    %c0_i32_0 = arith.constant 0 : i32
    return %arg0, %c0_i32 : i32, i32
  }
}

module attributes {stable_mosaic.version = 11 : i64} {
  func.func @_bn_epilogue_kernel(%arg0: i32, %arg1: memref<128x128xbf16, #tpu.memory_space<vmem>>, %arg2: memref<1x128xf32, #tpu.memory_space<vmem>>, %arg3: memref<1x128xf32, #tpu.memory_space<vmem>>, %arg4: memref<128x128xbf16, #tpu.memory_space<vmem>>) attributes {dimension_semantics = [#tpu.dimension_semantics<parallel>], iteration_bounds = array<i64: 1>, scalar_prefetch = 0 : i64, scratch_operands = 0 : i64, tpu.core_type = #tpu.core_type<tc>, window_params = [{transform_indices = @transform_0, window_bounds = array<i64: 128, 128>}, {pipeline_mode = #tpu.pipeline_mode<synchronous>, transform_indices = @transform_1, window_bounds = array<i64: 1, 128>}, {pipeline_mode = #tpu.pipeline_mode<synchronous>, transform_indices = @transform_2, window_bounds = array<i64: 1, 128>}, {transform_indices = @transform_3, window_bounds = array<i64: 128, 128>}]} {
    %c0 = arith.constant 0 : index
    %c0_0 = arith.constant 0 : index
    %0 = vector.load %arg1[%c0, %c0_0] : memref<128x128xbf16, #tpu.memory_space<vmem>>, vector<128x128xbf16>
    %1 = arith.extf %0 : vector<128x128xbf16> to vector<128x128xf32>
    %c0_1 = arith.constant 0 : index
    %c0_2 = arith.constant 0 : index
    %2 = vector.load %arg2[%c0_1, %c0_2] : memref<1x128xf32, #tpu.memory_space<vmem>>, vector<1x128xf32>
    %3 = vector.broadcast %2 : vector<1x128xf32> to vector<128x128xf32>
    %4 = arith.mulf %1, %3 : vector<128x128xf32>
    %c0_3 = arith.constant 0 : index
    %c0_4 = arith.constant 0 : index
    %5 = vector.load %arg3[%c0_3, %c0_4] : memref<1x128xf32, #tpu.memory_space<vmem>>, vector<1x128xf32>
    %6 = vector.broadcast %5 : vector<1x128xf32> to vector<128x128xf32>
    %7 = arith.addf %4, %6 : vector<128x128xf32>
    %cst = arith.constant 0.000000e+00 : f32
    %8 = vector.broadcast %cst : f32 to vector<128x128xf32>
    %9 = arith.maximumf %7, %8 : vector<128x128xf32>
    %10 = arith.truncf %9 : vector<128x128xf32> to vector<128x128xbf16>
    %c0_5 = arith.constant 0 : index
    %c0_6 = arith.constant 0 : index
    %11 = vector.load %arg4[%c0_5, %c0_6] : memref<128x128xbf16, #tpu.memory_space<vmem>>, vector<128x128xbf16>
    tpu.vector_store %arg4[%c0_5, %c0_6], %10 {strides = array<i32>} : memref<128x128xbf16, #tpu.memory_space<vmem>>, vector<128x128xbf16>,
    return
  }
  func.func @transform_0(%arg0: i32) -> (i32, i32) {
    %c0_i32 = arith.constant 0 : i32
    %c0_i32_0 = arith.constant 0 : i32
    return %arg0, %c0_i32 : i32, i32
  }
  func.func @transform_1(%arg0: i32) -> (i32, i32) {
    %c0_i32 = arith.constant 0 : i32
    %c0_i32_0 = arith.constant 0 : i32
    %c0_i32_1 = arith.constant 0 : i32
    return %c0_i32, %c0_i32_0 : i32, i32
  }
  func.func @transform_2(%arg0: i32) -> (i32, i32) {
    %c0_i32 = arith.constant 0 : i32
    %c0_i32_0 = arith.constant 0 : i32
    %c0_i32_1 = arith.constant 0 : i32
    return %c0_i32, %c0_i32_0 : i32, i32
  }
  func.func @transform_3(%arg0: i32) -> (i32, i32) {
    %c0_i32 = arith.constant 0 : i32
    %c0_i32_0 = arith.constant 0 : i32
    return %arg0, %c0_i32 : i32, i32
  }
}

module attributes {stable_mosaic.version = 11 : i64} {
  func.func @_bn_epilogue_kernel(%arg0: i32, %arg1: memref<128x128xbf16, #tpu.memory_space<vmem>>, %arg2: memref<1x128xf32, #tpu.memory_space<vmem>>, %arg3: memref<1x128xf32, #tpu.memory_space<vmem>>, %arg4: memref<128x128xbf16, #tpu.memory_space<vmem>>, %arg5: memref<1x128xf32, #tpu.memory_space<vmem>>, %arg6: memref<1x128xf32, #tpu.memory_space<vmem>>, %arg7: memref<128x128xf32, #tpu.memory_space<vmem>>) attributes {dimension_semantics = [#tpu.dimension_semantics<parallel>], iteration_bounds = array<i64: 1>, scalar_prefetch = 0 : i64, scratch_operands = 0 : i64, tpu.core_type = #tpu.core_type<tc>, window_params = [{transform_indices = @transform_0, window_bounds = array<i64: 128, 128>}, {pipeline_mode = #tpu.pipeline_mode<synchronous>, transform_indices = @transform_1, window_bounds = array<i64: 1, 128>}, {pipeline_mode = #tpu.pipeline_mode<synchronous>, transform_indices = @transform_2, window_bounds = array<i64: 1, 128>}, {transform_indices = @transform_3, window_bounds = array<i64: 128, 128>}, {pipeline_mode = #tpu.pipeline_mode<synchronous>, transform_indices = @transform_4, window_bounds = array<i64: 1, 128>}, {pipeline_mode = #tpu.pipeline_mode<synchronous>, transform_indices = @transform_5, window_bounds = array<i64: 1, 128>}, {transform_indices = @transform_6, window_bounds = array<i64: 128, 128>}]} {
    %c0 = arith.constant 0 : index
    %c0_0 = arith.constant 0 : index
    %0 = vector.load %arg1[%c0, %c0_0] : memref<128x128xbf16, #tpu.memory_space<vmem>>, vector<128x128xbf16>
    %1 = arith.extf %0 : vector<128x128xbf16> to vector<128x128xf32>
    %c0_1 = arith.constant 0 : index
    %c0_2 = arith.constant 0 : index
    %2 = vector.load %arg2[%c0_1, %c0_2] : memref<1x128xf32, #tpu.memory_space<vmem>>, vector<1x128xf32>
    %3 = vector.broadcast %2 : vector<1x128xf32> to vector<128x128xf32>
    %4 = arith.mulf %1, %3 : vector<128x128xf32>
    %c0_3 = arith.constant 0 : index
    %c0_4 = arith.constant 0 : index
    %5 = vector.load %arg3[%c0_3, %c0_4] : memref<1x128xf32, #tpu.memory_space<vmem>>, vector<1x128xf32>
    %6 = vector.broadcast %5 : vector<1x128xf32> to vector<128x128xf32>
    %7 = arith.addf %4, %6 : vector<128x128xf32>
    %c0_5 = arith.constant 0 : index
    %c0_6 = arith.constant 0 : index
    %8 = vector.load %arg4[%c0_5, %c0_6] : memref<128x128xbf16, #tpu.memory_space<vmem>>, vector<128x128xbf16>
    %9 = arith.extf %8 : vector<128x128xbf16> to vector<128x128xf32>
    %c0_7 = arith.constant 0 : index
    %c0_8 = arith.constant 0 : index
    %10 = vector.load %arg5[%c0_7, %c0_8] : memref<1x128xf32, #tpu.memory_space<vmem>>, vector<1x128xf32>
    %11 = vector.broadcast %10 : vector<1x128xf32> to vector<128x128xf32>
    %12 = arith.mulf %9, %11 : vector<128x128xf32>
    %c0_9 = arith.constant 0 : index
    %c0_10 = arith.constant 0 : index
    %13 = vector.load %arg6[%c0_9, %c0_10] : memref<1x128xf32, #tpu.memory_space<vmem>>, vector<1x128xf32>
    %14 = vector.broadcast %13 : vector<1x128xf32> to vector<128x128xf32>
    %15 = arith.addf %12, %14 : vector<128x128xf32>
    %16 = arith.addf %7, %15 : vector<128x128xf32>
    %cst = arith.constant 0.000000e+00 : f32
    %17 = vector.broadcast %cst : f32 to vector<128x128xf32>
    %18 = arith.maximumf %16, %17 : vector<128x128xf32>
    %c0_11 = arith.constant 0 : index
    %c0_12 = arith.constant 0 : index
    %19 = vector.load %arg7[%c0_11, %c0_12] : memref<128x128xf32, #tpu.memory_space<vmem>>, vector<128x128xf32>
    tpu.vector_store %arg7[%c0_11, %c0_12], %18 {strides = array<i32>} : memref<128x128xf32, #tpu.memory_space<vmem>>, vector<128x128xf32>,
    return
  }
  func.func @transform_0(%arg0: i32) -> (i32, i32) {
    %c0_i32 = arith.constant 0 : i32
    %c0_i32_0 = arith.constant 0 : i32
    return %arg0, %c0_i32 : i32, i32
  }
  func.func @transform_1(%arg0: i32) -> (i32, i32) {
    %c0_i32 = arith.constant 0 : i32
    %c0_i32_0 = arith.constant 0 : i32
    %c0_i32_1 = arith.constant 0 : i32
    return %c0_i32, %c0_i32_0 : i32, i32
  }
  func.func @transform_2(%arg0: i32) -> (i32, i32) {
    %c0_i32 = arith.constant 0 : i32
    %c0_i32_0 = arith.constant 0 : i32
    %c0_i32_1 = arith.constant 0 : i32
    return %c0_i32, %c0_i32_0 : i32, i32
  }
  func.func @transform_3(%arg0: i32) -> (i32, i32) {
    %c0_i32 = arith.constant 0 : i32
    %c0_i32_0 = arith.constant 0 : i32
    return %arg0, %c0_i32 : i32, i32
  }
  func.func @transform_4(%arg0: i32) -> (i32, i32) {
    %c0_i32 = arith.constant 0 : i32
    %c0_i32_0 = arith.constant 0 : i32
    %c0_i32_1 = arith.constant 0 : i32
    return %c0_i32, %c0_i32_0 : i32, i32
  }
  func.func @transform_5(%arg0: i32) -> (i32, i32) {
    %c0_i32 = arith.constant 0 : i32
    %c0_i32_0 = arith.constant 0 : i32
    %c0_i32_1 = arith.constant 0 : i32
    return %c0_i32, %c0_i32_0 : i32, i32
  }
  func.func @transform_6(%arg0: i32) -> (i32, i32) {
    %c0_i32 = arith.constant 0 : i32
    %c0_i32_0 = arith.constant 0 : i32
    return %arg0, %c0_i32 : i32, i32
  }
}

</mosaic_0001>

<bundles_post_ra>
// kernel: basic_block_forward.5
= control target key start
LH: loop header
LB: loop body
LE: loop exit
PB: predicated region body
PF: predicated region fallthrough
CT: control target
= control target key end

     0   :  { %s555_s1 = inlined_call_operand.vmem [shape: bf16[128,128], index: 1, kind: input, shape index: {}]   ;;  %s556_s0 = inlined_call_operand.vmem [shape: bf16[128,128], index: 0, kind: input, shape index: {}]   ;;  %s557_s2 = inlined_call_operand.vmem [shape: bf16[128,128], index: 2, kind: output, shape index: {0}]   ;;  %s558_s3 = inlined_call_operand.vmem [shape: f32[8,128], index: 3, kind: output, shape index: {1}]   ;;  %s559_s4 = inlined_call_operand.vmem [shape: f32[8,128], index: 4, kind: output, shape index: {2}]  }
   0x1   :  { %v374_v0 = vld [vmem:[%s555_s1 + $0x38] sm:$0xff]  ;;  %v373_v1 = vld [vmem:[%s555_s1 + $0x30] sm:$0xff]  ;;  %v372_v2 = vld [vmem:[%s555_s1 + $0x28] sm:$0xff] }
   0x2   :  { %142 = vmatpush.bf16.msra.mxu0 %v374_v0  ;;  %422 = vmatpush.bf16.msra.mxu1 %v374_v0  ;;  %v371_v3 = vld [vmem:[%s555_s1 + $0x20] sm:$0xff]  ;;  %v370_v4 = vld [vmem:[%s555_s1 + $0x18] sm:$0xff]  ;;  %v369_v5 = vld [vmem:[%s555_s1 + $0x10] sm:$0xff] }
   0x3   :  { %423 = vmatpush.bf16.msra.mxu2 %v374_v0  ;;  %424 = vmatpush.bf16.msra.mxu3 %v374_v0  ;;  %v368_v6 = vld [vmem:[%s555_s1 + $0x8] sm:$0xff]  ;;  %v367_v7 = vld [vmem:[%s555_s1] sm:$0xff]  ;;  %v361_v9 = vld [vmem:[%s556_s0 + $0x10] sm:$0xff] }
   0x4   :  { %v359_v8 = vld [vmem:[%s556_s0] sm:$0xff]  ;;  %v365_v11 = vld [vmem:[%s556_s0 + $0x30] sm:$0xff]  ;;  %v360_v12 = vld [vmem:[%s556_s0 + $0x8] sm:$0xff] }
   0x5   :  { %v363_v10 = vld [vmem:[%s556_s0 + $0x20] sm:$0xff]  ;;  %v362_v13 = vld [vmem:[%s556_s0 + $0x18] sm:$0xff]  ;;  %v364_v14 = vld [vmem:[%s556_s0 + $0x28] sm:$0xff] }
   0x6   :  { %143 = vmatpush.bf16.msra.mxu0 %v373_v1  ;;  %425 = vmatpush.bf16.msra.mxu1 %v373_v1  ;;  %v366_v15 = vld [vmem:[%s556_s0 + $0x38] sm:$0xff] }
   0x7   :  { %426 = vmatpush.bf16.msra.mxu2 %v373_v1  ;;  %427 = vmatpush.bf16.msra.mxu3 %v373_v1 }
   0xa   :  { %144 = vmatpush.bf16.msra.mxu0 %v372_v2  ;;  %428 = vmatpush.bf16.msra.mxu1 %v372_v2 }
   0xb   :  { %429 = vmatpush.bf16.msra.mxu2 %v372_v2  ;;  %430 = vmatpush.bf16.msra.mxu3 %v372_v2 }
   0xe   :  { %145 = vmatpush.bf16.msra.mxu0 %v371_v3  ;;  %431 = vmatpush.bf16.msra.mxu1 %v371_v3 }
   0xf   :  { %432 = vmatpush.bf16.msra.mxu2 %v371_v3  ;;  %433 = vmatpush.bf16.msra.mxu3 %v371_v3 }
  0x12   :  { %146 = vmatpush.bf16.msra.mxu0 %v370_v4  ;;  %434 = vmatpush.bf16.msra.mxu1 %v370_v4 }
  0x13   :  { %435 = vmatpush.bf16.msra.mxu2 %v370_v4  ;;  %436 = vmatpush.bf16.msra.mxu3 %v370_v4 }
  0x16   :  { %147 = vmatpush.bf16.msra.mxu0 %v369_v5  ;;  %437 = vmatpush.bf16.msra.mxu1 %v369_v5 }
  0x17   :  { %438 = vmatpush.bf16.msra.mxu2 %v369_v5  ;;  %439 = vmatpush.bf16.msra.mxu3 %v369_v5 }
  0x1a   :  { %148 = vmatpush.bf16.msra.mxu0 %v368_v6  ;;  %440 = vmatpush.bf16.msra.mxu1 %v368_v6 }
  0x1b   :  { %441 = vmatpush.bf16.msra.mxu2 %v368_v6  ;;  %442 = vmatpush.bf16.msra.mxu3 %v368_v6 }
  0x1e   :  { %149 = vmatpush.bf16.msra.mxu0 %v367_v7  ;;  %443 = vmatpush.bf16.msra.mxu1 %v367_v7 }
  0x1f   :  { %444 = vmatpush.bf16.msra.mxu2 %v367_v7  ;;  %445 = vmatpush.bf16.msra.mxu3 %v367_v7 }
  0x21   :  { %150 = vmatmul.bf16.vlgmr.msra.gmra.mxu0 %v359_v8  ;;  %160 = vmatmul.bf16.vlgmr.msra.gmra.mxu1 %v361_v9 }
  0x22   :  { %170 = vmatmul.bf16.vlgmr.msra.gmra.mxu2 %v363_v10  ;;  %180 = vmatmul.bf16.vlgmr.msra.gmra.mxu3 %v365_v11 }
  0x31   :  { %155 = vmatmul.bf16.gmra.mxu0 %v360_v12  ;;  %165 = vmatmul.bf16.gmra.mxu1 %v362_v13 }
  0x32   :  { %175 = vmatmul.bf16.gmra.mxu2 %v364_v14  ;;  %185 = vmatmul.bf16.gmra.mxu3 %v366_v15 }
  0x9e   :  { %v151_v16 = vpop.f32.mrf.mxu0  ;;  %v161_v17 = vpop.f32.mrf.mxu1 }
  0x9f   :  { %v244_v31 = vmul.f32 %v151_v16, %v151_v16  ;;  %v248_v45 = vmul.f32 %v161_v17, %v161_v17 }
  0xa5   :  { %v171_v18 = vpop.f32.mrf.mxu2  ;;  %v519_v19 = vpop.f32.mrf.mxu3 }
  0xa6   :  { %v153_v20 = vpop.f32.mrf.mxu0  ;;  %v163_v21 = vpop.f32.mrf.mxu1  ;;  %v252_v61 = vmul.f32 %v171_v18, %v171_v18  ;;  %v256_v9 = vmul.f32 %v519_v19, %v519_v19 }
  0xa7   :  { %v378_v22 = vpack.c.bf16 %v153_v20, %v151_v16  ;;  %v388_v23 = vpack.c.bf16 %v163_v21, %v161_v17  ;;  %v245_v30 = vmul.f32 %v153_v20, %v153_v20  ;;  %v223_v33 = vadd.f32 %v153_v20, %v151_v16 }
  0xa8   :  { %v249_v48 = vmul.f32 %v163_v21, %v163_v21 }
  0xa9   :  { %379 = vst [vmem:[%s557_s2] sm:$0xff] %v378_v22   ;;  %v260_v34 = vadd.f32 %v245_v30, %v244_v31 }
  0xaa   :  { %416 = vst [vmem:[%s557_s2 + $0x10] sm:$0xff] %v388_v23  }
  0xad   :  { %v173_v24 = vpop.f32.mrf.mxu2  ;;  %v183_v25 = vpop.f32.mrf.mxu3 }
  0xae   :  { %v156_v26 = vpop.f32.mrf.mxu0  ;;  %v166_v27 = vpop.f32.mrf.mxu1  ;;  %v398_v28 = vpack.c.bf16 %v173_v24, %v171_v18  ;;  %v408_v29 = vpack.c.bf16 %v183_v25, %v519_v19  ;;  %v253_v0 = vmul.f32 %v173_v24, %v173_v24  ;;  %v257_v12 = vmul.f32 %v183_v25, %v183_v25 }
  0xaf   :  { %v246_v32 = vmul.f32 %v156_v26, %v156_v26  ;;  %v224_v35 = vadd.f32 %v223_v33, %v156_v26  ;;  %v250_v51 = vmul.f32 %v166_v27, %v166_v27 }
  0xb0   :  { %418 = vst [vmem:[%s557_s2 + $0x20] sm:$0xff] %v398_v28  }
  0xb1   :  { %420 = vst [vmem:[%s557_s2 + $0x30] sm:$0xff] %v408_v29   ;;  %v261_v38 = vadd.f32 %v260_v34, %v246_v32 }
  0xb5   :  { %v176_v36 = vpop.f32.mrf.mxu2  ;;  %v186_v37 = vpop.f32.mrf.mxu3 }
  0xb6   :  { %v158_v39 = vpop.f32.mrf.mxu0  ;;  %v168_v40 = vpop.f32.mrf.mxu1  ;;  %v254_v4 = vmul.f32 %v176_v36, %v176_v36  ;;  %v258_v16 = vmul.f32 %v186_v37, %v186_v37 }
  0xb7   :  { %v383_v41 = vpack.c.bf16 %v158_v39, %v156_v26  ;;  %v225_v42 = vadd.f32 %v224_v35, %v158_v39  ;;  %v247_v43 = vmul.f32 %v158_v39, %v158_v39  ;;  %v393_v44 = vpack.c.bf16 %v168_v40, %v166_v27 }
  0xb8   :  { %v251_v59 = vmul.f32 %v168_v40, %v168_v40 }
  0xb9   :  { %415 = vst [vmem:[%s557_s2 + $0x8] sm:$0xff] %v383_v41   ;;  %v226_v46 = vadd.f32 %v225_v42, %v161_v17  ;;  %v262_v47 = vadd.f32 %v261_v38, %v247_v43 }
  0xba   :  { %417 = vst [vmem:[%s557_s2 + $0x18] sm:$0xff] %v393_v44  }
  0xbb   :  { %v263_v49 = vadd.f32 %v262_v47, %v248_v45  ;;  %v227_v50 = vadd.f32 %v226_v46, %v163_v21 }
  0xbd   :  { %v228_v52 = vadd.f32 %v227_v50, %v166_v27  ;;  %v264_v53 = vadd.f32 %v263_v49, %v249_v48  ;;  %v178_v54 = vpop.f32.mrf.mxu2  ;;  %v188_v55 = vpop.f32.mrf.mxu3 }
  0xbe   :  { %v403_v56 = vpack.c.bf16 %v178_v54, %v176_v36  ;;  %v413_v57 = vpack.c.bf16 %v188_v55, %v186_v37  ;;  %v255_v8 = vmul.f32 %v178_v54, %v178_v54  ;;  %v259_v21 = vmul.f32 %v188_v55, %v188_v55 }
  0xbf   :  { %v229_v58 = vadd.f32 %v228_v52, %v168_v40  ;;  %v265_v60 = vadd.f32 %v264_v53, %v250_v51 }
  0xc0   :  { %419 = vst [vmem:[%s557_s2 + $0x28] sm:$0xff] %v403_v56  }
  0xc1   :  { %v230_v62 = vadd.f32 %v229_v58, %v171_v18  ;;  %v266_v63 = vadd.f32 %v265_v60, %v251_v59  ;;  %421 = vst [vmem:[%s557_s2 + $0x38] sm:$0xff] %v413_v57  }
  0xc3   :  { %v267_v1 = vadd.f32 %v266_v63, %v252_v61  ;;  %v231_v2 = vadd.f32 %v230_v62, %v173_v24 }
  0xc5   :  { %v232_v3 = vadd.f32 %v231_v2, %v176_v36  ;;  %v268_v5 = vadd.f32 %v267_v1, %v253_v0 }
  0xc7   :  { %v269_v6 = vadd.f32 %v268_v5, %v254_v4  ;;  %v233_v7 = vadd.f32 %v232_v3, %v178_v54 }
  0xc9   :  { %v234_v10 = vadd.f32 %v233_v7, %v519_v19  ;;  %v270_v11 = vadd.f32 %v269_v6, %v255_v8 }
  0xcb   :  { %v271_v13 = vadd.f32 %v270_v11, %v256_v9  ;;  %v235_v14 = vadd.f32 %v234_v10, %v183_v25 }
  0xcd   :  { %v236_v15 = vadd.f32 %v235_v14, %v186_v37  ;;  %v272_v17 = vadd.f32 %v271_v13, %v257_v12 }
  0xcf   :  { %v273_v18 = vadd.f32 %v272_v17, %v258_v16  ;;  %v237_v20 = vadd.f32 %v236_v15, %v188_v55 }
  0xd1   :  { %v238_v22 = vrot.slane %v237_v20, 4  ;;  %v274_v23 = vadd.f32 %v273_v18, %v259_v21 }
  0xd3   :  { %v239_v24 = vadd.f32 %v238_v22, %v237_v20  ;;  %v275_v26 = vrot.slane %v274_v23, 4 }
  0xd5   :  { %v240_v27 = vrot.slane %v239_v24, 2  ;;  %v276_v28 = vadd.f32 %v275_v26, %v274_v23 }
  0xd7   :  { %v241_v29 = vadd.f32 %v240_v27, %v239_v24  ;;  %v277_v30 = vrot.slane %v276_v28, 2 }
  0xd9   :  { %v242_v31 = vrot.slane %v241_v29, 1  ;;  %v278_v19 = vadd.f32 %v277_v30, %v276_v28 }
  0xdb   :  { %v243_v32 = vadd.f32 %v242_v31, %v241_v29  ;;  %v279_v33 = vrot.slane %v278_v19, 1 }
  0xdd   :  { %v280_v34 = vadd.f32 %v279_v33, %v278_v19  ;;  %281 = vst [vmem:[%s558_s3] sm:$0xff] %v243_v32 }
  0xdf   :  { %282 = vst [vmem:[%s559_s4] sm:$0xff] %v280_v34 }

// kernel: basic_block_forward.6
= control target key start
LH: loop header
LB: loop body
LE: loop exit
PB: predicated region body
PF: predicated region fallthrough
CT: control target
= control target key end

     0   :  { %s336_s0 = inlined_call_operand.vmem [shape: bf16[128,128], index: 0, kind: input, shape index: {}]   ;;  %s337_s1 = inlined_call_operand.vmem [shape: f32[1,128], index: 1, kind: input, shape index: {}]   ;;  %s338_s2 = inlined_call_operand.vmem [shape: f32[1,128], index: 2, kind: input, shape index: {}]   ;;  %s339_s3 = inlined_call_operand.vmem [shape: bf16[128,128], index: 3, kind: output, shape index: {}]  }
   0x1   :  { %v139_v0 = vld [vmem:[%s336_s0] sm:$0xff]   ;;  %v210_v5 = vld [vmem:[%s336_s0 + $0x8] sm:$0xff]   ;;  %v211_v8 = vld [vmem:[%s336_s0 + $0x10] sm:$0xff]  }
   0x2   :  { %v252_v1 = vld [vmem:[%s337_s1] ss:$0 sm:$0xff]  ;;  %v140_v2 = vunpack.c.l.bf16 %v139_v0  ;;  %v141_v3 = vunpack.c.h.bf16 %v139_v0  ;;  %v144_v6 = vunpack.c.l.bf16 %v210_v5  ;;  %v145_v7 = vunpack.c.h.bf16 %v210_v5  ;;  %v212_v9 = vld [vmem:[%s336_s0 + $0x18] sm:$0xff]   ;;  %v214_v35 = vld [vmem:[%s336_s0 + $0x28] sm:$0xff]  }
   0x3   :  { %v257_v4 = vld [vmem:[%s338_s2] ss:$0 sm:$0xff]  ;;  %v148_v12 = vunpack.c.l.bf16 %v211_v8  ;;  %v149_v13 = vunpack.c.h.bf16 %v211_v8  ;;  %v152_v16 = vunpack.c.l.bf16 %v212_v9  ;;  %v153_v17 = vunpack.c.h.bf16 %v212_v9  ;;  %v215_v40 = vld [vmem:[%s336_s0 + $0x30] sm:$0xff]   ;;  %v216_v45 = vld [vmem:[%s336_s0 + $0x38] sm:$0xff]  }
   0x4   :  { %v50_v10 = vmul.f32 %v252_v1, %v140_v2  ;;  %v51_v11 = vmul.f32 %v252_v1, %v141_v3  ;;  %v52_v14 = vmul.f32 %v252_v1, %v144_v6  ;;  %v53_v15 = vmul.f32 %v252_v1, %v145_v7  ;;  %v213_v26 = vld [vmem:[%s336_s0 + $0x20] sm:$0xff]  }
   0x5   :  { %v54_v20 = vmul.f32 %v252_v1, %v148_v12  ;;  %v55_v21 = vmul.f32 %v252_v1, %v149_v13  ;;  %v56_v24 = vmul.f32 %v252_v1, %v152_v16  ;;  %v57_v25 = vmul.f32 %v252_v1, %v153_v17 }
   0x6   :  { %v70_v18 = vadd.f32 %v257_v4, %v50_v10  ;;  %v71_v19 = vadd.f32 %v257_v4, %v51_v11  ;;  %v72_v22 = vadd.f32 %v257_v4, %v52_v14  ;;  %v73_v23 = vadd.f32 %v257_v4, %v53_v15 }
   0x7   :  { %v74_v29 = vadd.f32 %v257_v4, %v54_v20  ;;  %v75_v30 = vadd.f32 %v257_v4, %v55_v21  ;;  %v76_v33 = vadd.f32 %v257_v4, %v56_v24  ;;  %v77_v34 = vadd.f32 %v257_v4, %v57_v25 }
   0x8   :  { %v86_v27 = vmax.f32 %v70_v18, 0.0  ;;  %v87_v28 = vmax.f32 %v71_v19, 0.0  ;;  %v88_v31 = vmax.f32 %v72_v22, 0.0  ;;  %v89_v32 = vmax.f32 %v73_v23, 0.0 }
   0x9   :  { %v90_v37 = vmax.f32 %v74_v29, 0.0  ;;  %v91_v38 = vmax.f32 %v75_v30, 0.0  ;;  %v156_v39 = vunpack.c.l.bf16 %v213_v26  ;;  %v92_v42 = vmax.f32 %v76_v33, 0.0 }
   0xa   :  { %v173_v36 = vpack.c.bf16 %v87_v28, %v86_v27  ;;  %v178_v41 = vpack.c.bf16 %v89_v32, %v88_v31  ;;  %v93_v43 = vmax.f32 %v77_v34, 0.0  ;;  %v157_v44 = vunpack.c.h.bf16 %v213_v26 }
   0xb   :  { %v183_v46 = vpack.c.bf16 %v91_v38, %v90_v37  ;;  %v58_v47 = vmul.f32 %v252_v1, %v156_v39  ;;  %v160_v48 = vunpack.c.l.bf16 %v214_v35  ;;  %v161_v49 = vunpack.c.h.bf16 %v214_v35 }
   0xc   :  { %174 = vst [vmem:[%s339_s3] sm:$0xff] %v173_v36   ;;  %v188_v50 = vpack.c.bf16 %v93_v43, %v92_v42  ;;  %v59_v51 = vmul.f32 %v252_v1, %v157_v44  ;;  %v164_v52 = vunpack.c.l.bf16 %v215_v40  ;;  %v165_v53 = vunpack.c.h.bf16 %v215_v40 }
   0xd   :  { %217 = vst [vmem:[%s339_s3 + $0x8] sm:$0xff] %v178_v41   ;;  %v78_v54 = vadd.f32 %v257_v4, %v58_v47  ;;  %v60_v55 = vmul.f32 %v252_v1, %v160_v48  ;;  %v61_v56 = vmul.f32 %v252_v1, %v161_v49  ;;  %v168_v57 = vunpack.c.l.bf16 %v216_v45 }
   0xe   :  { %218 = vst [vmem:[%s339_s3 + $0x10] sm:$0xff] %v183_v46   ;;  %v79_v58 = vadd.f32 %v257_v4, %v59_v51  ;;  %v62_v59 = vmul.f32 %v252_v1, %v164_v52  ;;  %v63_v60 = vmul.f32 %v252_v1, %v165_v53  ;;  %v169_v61 = vunpack.c.h.bf16 %v216_v45 }
   0xf   :  { %219 = vst [vmem:[%s339_s3 + $0x18] sm:$0xff] %v188_v50   ;;  %v94_v62 = vmax.f32 %v78_v54, 0.0  ;;  %v80_v63 = vadd.f32 %v257_v4, %v60_v55  ;;  %v81_v0 = vadd.f32 %v257_v4, %v61_v56  ;;  %v64_v2 = vmul.f32 %v252_v1, %v168_v57 }
  0x10   :  { %v95_v3 = vmax.f32 %v79_v58, 0.0  ;;  %v82_v5 = vadd.f32 %v257_v4, %v62_v59  ;;  %v83_v6 = vadd.f32 %v257_v4, %v63_v60  ;;  %v65_v7 = vmul.f32 %v252_v1, %v169_v61 }
  0x11   :  { %v96_v8 = vmax.f32 %v80_v63, 0.0  ;;  %v97_v9 = vmax.f32 %v81_v0, 0.0  ;;  %v84_v10 = vadd.f32 %v257_v4, %v64_v2 }
  0x12   :  { %v193_v11 = vpack.c.bf16 %v95_v3, %v94_v62  ;;  %v98_v12 = vmax.f32 %v82_v5, 0.0  ;;  %v99_v13 = vmax.f32 %v83_v6, 0.0  ;;  %v85_v14 = vadd.f32 %v257_v4, %v65_v7 }
  0x13   :  { %v198_v15 = vpack.c.bf16 %v97_v9, %v96_v8  ;;  %v100_v16 = vmax.f32 %v84_v10, 0.0 }
  0x14   :  { %220 = vst [vmem:[%s339_s3 + $0x20] sm:$0xff] %v193_v11   ;;  %v203_v17 = vpack.c.bf16 %v99_v13, %v98_v12  ;;  %v101_v18 = vmax.f32 %v85_v14, 0.0 }
  0x15   :  { %221 = vst [vmem:[%s339_s3 + $0x28] sm:$0xff] %v198_v15  }
  0x16   :  { %222 = vst [vmem:[%s339_s3 + $0x30] sm:$0xff] %v203_v17   ;;  %v208_v1 = vpack.c.bf16 %v101_v18, %v100_v16 }
  0x18   :  { %223 = vst [vmem:[%s339_s3 + $0x38] sm:$0xff] %v208_v1  }

// kernel: basic_block_forward.9
= control target key start
LH: loop header
LB: loop body
LE: loop exit
PB: predicated region body
PF: predicated region fallthrough
CT: control target
= control target key end

     0   :  { %s516_s0 = inlined_call_operand.vmem [shape: bf16[128,128], index: 0, kind: input, shape index: {}]   ;;  %s517_s1 = inlined_call_operand.vmem [shape: f32[1,128], index: 1, kind: input, shape index: {}]   ;;  %s518_s2 = inlined_call_operand.vmem [shape: f32[1,128], index: 2, kind: input, shape index: {}]   ;;  %s519_s3 = inlined_call_operand.vmem [shape: bf16[128,128], index: 3, kind: input, shape index: {}]   ;;  %s520_s4 = inlined_call_operand.vmem [shape: f32[1,128], index: 4, kind: input, shape index: {}]   ;;  %s521_s5 = inlined_call_operand.vmem [shape: f32[1,128], index: 5, kind: input, shape index: {}]   ;;  %s522_s6 = inlined_call_operand.vmem [shape: f32[128,128], index: 6, kind: output, shape index: {}]  }
   0x1   :  { %v220_v0 = vld [vmem:[%s516_s0] sm:$0xff]   ;;  %v283_v12 = vld [vmem:[%s516_s0 + $0x8] sm:$0xff]   ;;  %v284_v18 = vld [vmem:[%s516_s0 + $0x10] sm:$0xff]  }
   0x2   :  { %v342_v1 = vld [vmem:[%s517_s1] ss:$0 sm:$0xff]  ;;  %v221_v2 = vunpack.c.l.bf16 %v220_v0  ;;  %v222_v5 = vunpack.c.h.bf16 %v220_v0  ;;  %v290_v13 = vld [vmem:[%s519_s3 + $0x8] sm:$0xff]   ;;  %v225_v16 = vunpack.c.l.bf16 %v283_v12  ;;  %v291_v19 = vld [vmem:[%s519_s3 + $0x10] sm:$0xff]   ;;  %v226_v22 = vunpack.c.h.bf16 %v283_v12 }
   0x3   :  { %v347_v3 = vld [vmem:[%s518_s2] ss:$0 sm:$0xff]  ;;  %v257_v17 = vunpack.c.l.bf16 %v290_v13  ;;  %v258_v23 = vunpack.c.h.bf16 %v290_v13  ;;  %v229_v30 = vunpack.c.l.bf16 %v284_v18  ;;  %v261_v31 = vunpack.c.l.bf16 %v291_v19  ;;  %v285_v40 = vld [vmem:[%s516_s0 + $0x18] sm:$0xff]   ;;  %v287_v12 = vld [vmem:[%s516_s0 + $0x28] sm:$0xff]  }
   0x4   :  { %v252_v4 = vld [vmem:[%s519_s3] sm:$0xff]   ;;  %v59_v9 = vmul.f32 %v342_v1, %v221_v2  ;;  %v60_v11 = vmul.f32 %v342_v1, %v222_v5  ;;  %v61_v26 = vmul.f32 %v342_v1, %v225_v16  ;;  %v62_v28 = vmul.f32 %v342_v1, %v226_v22  ;;  %v292_v41 = vld [vmem:[%s519_s3 + $0x18] sm:$0xff]  }
   0x5   :  { %v253_v6 = vunpack.c.l.bf16 %v252_v4  ;;  %v355_v7 = vld [vmem:[%s520_s4] ss:$0 sm:$0xff]  ;;  %v254_v8 = vunpack.c.h.bf16 %v252_v4  ;;  %v63_v38 = vmul.f32 %v342_v1, %v229_v30  ;;  %v230_v45 = vunpack.c.h.bf16 %v284_v18  ;;  %v288_v30 = vld [vmem:[%s516_s0 + $0x30] sm:$0xff]  }
   0x6   :  { %v361_v10 = vld [vmem:[%s521_s5] ss:$0 sm:$0xff]  ;;  %v79_v20 = vadd.f32 %v347_v3, %v59_v9  ;;  %v80_v21 = vadd.f32 %v347_v3, %v60_v11  ;;  %v133_v27 = vmul.f32 %v355_v7, %v257_v17  ;;  %v134_v29 = vmul.f32 %v355_v7, %v258_v23 }
   0x7   :  { %v131_v14 = vmul.f32 %v355_v7, %v253_v6  ;;  %v132_v15 = vmul.f32 %v355_v7, %v254_v8  ;;  %v81_v34 = vadd.f32 %v347_v3, %v61_v26  ;;  %v82_v36 = vadd.f32 %v347_v3, %v62_v28  ;;  %v286_v54 = vld [vmem:[%s516_s0 + $0x20] sm:$0xff]  }
   0x8   :  { %v153_v35 = vadd.f32 %v361_v10, %v133_v27  ;;  %v154_v37 = vadd.f32 %v361_v10, %v134_v29  ;;  %v135_v39 = vmul.f32 %v355_v7, %v261_v31  ;;  %v83_v47 = vadd.f32 %v347_v3, %v63_v38  ;;  %v293_v59 = vld [vmem:[%s519_s3 + $0x20] sm:$0xff]  }
   0x9   :  { %v151_v24 = vadd.f32 %v361_v10, %v131_v14  ;;  %v152_v25 = vadd.f32 %v361_v10, %v132_v15  ;;  %v262_v49 = vunpack.c.h.bf16 %v291_v19  ;;  %v64_v51 = vmul.f32 %v342_v1, %v230_v45 }
   0xa   :  { %v169_v44 = vadd.f32 %v153_v35, %v81_v34  ;;  %v170_v46 = vadd.f32 %v154_v37, %v82_v36  ;;  %v155_v48 = vadd.f32 %v361_v10, %v135_v39  ;;  %v233_v52 = vunpack.c.l.bf16 %v285_v40  ;;  %v295_v35 = vld [vmem:[%s519_s3 + $0x30] sm:$0xff]  }
   0xb   :  { %v167_v32 = vadd.f32 %v151_v24, %v79_v20  ;;  %v168_v33 = vadd.f32 %v152_v25, %v80_v21  ;;  %v265_v53 = vunpack.c.l.bf16 %v292_v41  ;;  %v136_v57 = vmul.f32 %v355_v7, %v262_v49  ;;  %v294_v21 = vld [vmem:[%s519_s3 + $0x28] sm:$0xff]  }
   0xc   :  { %v185_v50 = vmax.f32 %v169_v44, 0.0  ;;  %v186_v55 = vmax.f32 %v170_v46, 0.0  ;;  %v171_v56 = vadd.f32 %v155_v48, %v83_v47  ;;  %v234_v58 = vunpack.c.h.bf16 %v285_v40  ;;  %v289_v48 = vld [vmem:[%s516_s0 + $0x38] sm:$0xff]  }
   0xd   :  { %v183_v42 = vmax.f32 %v167_v32, 0.0  ;;  %v184_v43 = vmax.f32 %v168_v33, 0.0  ;;  %v84_v60 = vadd.f32 %v347_v3, %v64_v51  ;;  %v65_v61 = vmul.f32 %v342_v1, %v233_v52 }
   0xe   :  { %201 = vst [vmem:[%s522_s6 + $0x10] sm:$0xff] %v185_v50  ;;  %v137_v62 = vmul.f32 %v355_v7, %v265_v53  ;;  %v266_v63 = vunpack.c.h.bf16 %v292_v41  ;;  %v187_v0 = vmax.f32 %v171_v56, 0.0  ;;  %v156_v2 = vadd.f32 %v361_v10, %v136_v57  ;;  %v296_v53 = vld [vmem:[%s519_s3 + $0x38] sm:$0xff]  }
   0xf   :  { %199 = vst [vmem:[%s522_s6] sm:$0xff] %v183_v42  ;;  %v66_v4 = vmul.f32 %v342_v1, %v234_v58  ;;  %v237_v5 = vunpack.c.l.bf16 %v286_v54  ;;  %v85_v6 = vadd.f32 %v347_v3, %v65_v61  ;;  %v269_v11 = vunpack.c.l.bf16 %v293_v59 }
  0x10   :  { %200 = vst [vmem:[%s522_s6 + $0x8] sm:$0xff] %v184_v43  ;;  %v157_v8 = vadd.f32 %v361_v10, %v137_v62  ;;  %v138_v9 = vmul.f32 %v355_v7, %v266_v63  ;;  %v172_v13 = vadd.f32 %v156_v2, %v84_v60  ;;  %v238_v16 = vunpack.c.h.bf16 %v286_v54 }
  0x11   :  { %202 = vst [vmem:[%s522_s6 + $0x18] sm:$0xff] %v186_v55  ;;  %v86_v14 = vadd.f32 %v347_v3, %v66_v4  ;;  %v67_v15 = vmul.f32 %v342_v1, %v237_v5  ;;  %v139_v19 = vmul.f32 %v355_v7, %v269_v11  ;;  %v270_v20 = vunpack.c.h.bf16 %v293_v59 }
  0x12   :  { %203 = vst [vmem:[%s522_s6 + $0x20] sm:$0xff] %v187_v0  ;;  %v173_v17 = vadd.f32 %v157_v8, %v85_v6  ;;  %v158_v18 = vadd.f32 %v361_v10, %v138_v9  ;;  %v188_v22 = vmax.f32 %v172_v13, 0.0  ;;  %v68_v24 = vmul.f32 %v342_v1, %v238_v16 }
  0x13   :  { %v87_v23 = vadd.f32 %v347_v3, %v67_v15  ;;  %v241_v25 = vunpack.c.l.bf16 %v287_v12  ;;  %v159_v28 = vadd.f32 %v361_v10, %v139_v19  ;;  %v140_v29 = vmul.f32 %v355_v7, %v270_v20 }
  0x14   :  { %v189_v26 = vmax.f32 %v173_v17, 0.0  ;;  %v174_v27 = vadd.f32 %v158_v18, %v86_v14  ;;  %204 = vst [vmem:[%s522_s6 + $0x28] sm:$0xff] %v188_v22  ;;  %v88_v31 = vadd.f32 %v347_v3, %v68_v24  ;;  %v273_v33 = vunpack.c.l.bf16 %v294_v21 }
  0x15   :  { %v69_v32 = vmul.f32 %v342_v1, %v241_v25  ;;  %v242_v34 = vunpack.c.h.bf16 %v287_v12  ;;  %v175_v37 = vadd.f32 %v159_v28, %v87_v23  ;;  %v160_v38 = vadd.f32 %v361_v10, %v140_v29 }
  0x16   :  { %205 = vst [vmem:[%s522_s6 + $0x30] sm:$0xff] %v189_v26  ;;  %v190_v36 = vmax.f32 %v174_v27, 0.0  ;;  %v274_v39 = vunpack.c.h.bf16 %v294_v21  ;;  %v141_v41 = vmul.f32 %v355_v7, %v273_v33  ;;  %v245_v43 = vunpack.c.l.bf16 %v288_v30 }
  0x17   :  { %v89_v40 = vadd.f32 %v347_v3, %v69_v32  ;;  %v70_v42 = vmul.f32 %v342_v1, %v242_v34  ;;  %v191_v44 = vmax.f32 %v175_v37, 0.0  ;;  %v176_v45 = vadd.f32 %v160_v38, %v88_v31 }
  0x18   :  { %206 = vst [vmem:[%s522_s6 + $0x38] sm:$0xff] %v190_v36  ;;  %v142_v46 = vmul.f32 %v355_v7, %v274_v39  ;;  %v277_v47 = vunpack.c.l.bf16 %v295_v35  ;;  %v161_v49 = vadd.f32 %v361_v10, %v141_v41  ;;  %v71_v51 = vmul.f32 %v342_v1, %v245_v43 }
  0x19   :  { %v90_v50 = vadd.f32 %v347_v3, %v70_v42  ;;  %v246_v52 = vunpack.c.h.bf16 %v288_v30  ;;  %207 = vst [vmem:[%s522_s6 + $0x40] sm:$0xff] %v191_v44  ;;  %v192_v54 = vmax.f32 %v176_v45, 0.0  ;;  %v278_v57 = vunpack.c.h.bf16 %v295_v35 }
  0x1a   :  { %v162_v55 = vadd.f32 %v361_v10, %v142_v46  ;;  %v143_v56 = vmul.f32 %v355_v7, %v277_v47  ;;  %v177_v58 = vadd.f32 %v161_v49, %v89_v40  ;;  %v91_v59 = vadd.f32 %v347_v3, %v71_v51 }
  0x1b   :  { %v72_v60 = vmul.f32 %v342_v1, %v246_v52  ;;  %v249_v61 = vunpack.c.l.bf16 %v289_v48  ;;  %208 = vst [vmem:[%s522_s6 + $0x48] sm:$0xff] %v192_v54  ;;  %v144_v0 = vmul.f32 %v355_v7, %v278_v57  ;;  %v281_v2 = vunpack.c.l.bf16 %v296_v53 }
  0x1c   :  { %v178_v62 = vadd.f32 %v162_v55, %v90_v50  ;;  %v163_v63 = vadd.f32 %v361_v10, %v143_v56  ;;  %v193_v4 = vmax.f32 %v177_v58, 0.0  ;;  %v250_v8 = vunpack.c.h.bf16 %v289_v48 }
  0x1d   :  { %v92_v5 = vadd.f32 %v347_v3, %v72_v60  ;;  %v73_v6 = vmul.f32 %v342_v1, %v249_v61  ;;  %v164_v12 = vadd.f32 %v361_v10, %v144_v0  ;;  %v145_v13 = vmul.f32 %v355_v7, %v281_v2 }
  0x1e   :  { %v194_v9 = vmax.f32 %v178_v62, 0.0  ;;  %v179_v11 = vadd.f32 %v163_v63, %v91_v59  ;;  %209 = vst [vmem:[%s522_s6 + $0x50] sm:$0xff] %v193_v4  ;;  %v74_v15 = vmul.f32 %v342_v1, %v250_v8  ;;  %v282_v16 = vunpack.c.h.bf16 %v296_v53 }
  0x1f   :  { %v93_v14 = vadd.f32 %v347_v3, %v73_v6  ;;  %v180_v18 = vadd.f32 %v164_v12, %v92_v5  ;;  %v165_v19 = vadd.f32 %v361_v10, %v145_v13 }
  0x20   :  { %210 = vst [vmem:[%s522_s6 + $0x58] sm:$0xff] %v194_v9  ;;  %v195_v17 = vmax.f32 %v179_v11, 0.0  ;;  %v94_v20 = vadd.f32 %v347_v3, %v74_v15  ;;  %v146_v21 = vmul.f32 %v355_v7, %v282_v16 }
  0x21   :  { %v196_v22 = vmax.f32 %v180_v18, 0.0  ;;  %v181_v23 = vadd.f32 %v165_v19, %v93_v14 }
  0x22   :  { %211 = vst [vmem:[%s522_s6 + $0x60] sm:$0xff] %v195_v17  ;;  %v166_v1 = vadd.f32 %v361_v10, %v146_v21 }
  0x23   :  { %212 = vst [vmem:[%s522_s6 + $0x68] sm:$0xff] %v196_v22  ;;  %v197_v24 = vmax.f32 %v181_v23, 0.0 }
  0x24   :  { %v182_v25 = vadd.f32 %v166_v1, %v94_v20 }
  0x25   :  { %213 = vst [vmem:[%s522_s6 + $0x70] sm:$0xff] %v197_v24 }
  0x26   :  { %v198_v3 = vmax.f32 %v182_v25, 0.0 }
  0x28   :  { %214 = vst [vmem:[%s522_s6 + $0x78] sm:$0xff] %v198_v3 }

</bundles_post_ra>
